<compile_context>
chip_gen: v7x
topology: tpu7x:2x2x1
jax: 0.10.0
libtpu: 0.0.40
codegen_flags: <defaults>
</compile_context>

<pallas_src>
import jax
import jax.numpy as jnp
from jax.experimental import pallas as pl
from jax.experimental.pallas import tpu as pltpu


def waveact_kernel(r_ref, phi_ref, x_ref, o_ref):
    # r/phi are f32 scalars in SMEM; x/o are VMEM tiles.
    x = x_ref[...].astype(jnp.float32)
    r = r_ref[0]
    phi = phi_ref[0]
    # single transcendental per element (EUP) instead of sin + cos
    o_ref[...] = (r * jnp.sin(x + phi)).astype(o_ref.dtype)


def waveact(x, w1, w2, *, target_block_bytes=1 << 20):
    """Elementwise WaveAct. x: any shape; w1, w2: shape (1,) params."""
    orig_shape = x.shape
    orig_dtype = x.dtype
    n = x.size
    itemsize = jnp.dtype(orig_dtype).itemsize

    # Harmonic form, computed once in f32 (independent of input dtype).
    w1f = w1.astype(jnp.float32).reshape(-1)[0:1]
    w2f = w2.astype(jnp.float32).reshape(-1)[0:1]
    r = jnp.sqrt(w1f * w1f + w2f * w2f)          # (1,) f32
    phi = jnp.arctan2(w2f, w1f)                  # (1,) f32

    # Pick the widest lane dim (multiple of 128) that tiles n with >=8 rows
    # -> long unmasked vst bursts, few large DMA descriptors.
    lane = 128
    for cand in (2048, 1024, 512, 256, 128):
        if n % cand == 0 and (n // cand) % 8 == 0:
            lane = cand
            break

    # Pad only if the flat size doesn't already fit (rare; NCHW sizes usually do).
    block_unit = lane * 8
    n_pad = pl.cdiv(n, block_unit) * block_unit
    x_flat = x.reshape(-1)
    padded = n_pad != n
    if padded:
        x_flat = jnp.pad(x_flat, (0, n_pad - n))
    rows = n_pad // lane
    x2d = x_flat.reshape(rows, lane)

    # Tile rows targeting ~target_block_bytes per block (multiple of 8,
    # dividing `rows` so there is never a ragged tail block).
    max_rows_by_bytes = max(8, (target_block_bytes // (lane * itemsize)) // 8 * 8)
    tile_rows = min(rows, max_rows_by_bytes)
    while rows % tile_rows != 0:
        tile_rows -= 8
    # Keep >=2 blocks when there is enough work so both v7x TCs are busy.
    if rows // tile_rows == 1 and rows >= 16:
        tile_rows = max(8, (rows // 2) // 8 * 8)
        while rows % tile_rows != 0:
            tile_rows -= 8

    grid = (rows // tile_rows,)

    cost = pl.CostEstimate(
        flops=2 * n_pad,                 # one add + one mul per element
        transcendentals=n_pad,           # one sin per element
        bytes_accessed=2 * n_pad * itemsize,
    )

    out2d = pl.pallas_call(
        waveact_kernel,
        out_shape=jax.ShapeDtypeStruct((rows, lane), orig_dtype),
        grid_spec=pltpu.PrefetchScalarGridSpec(
            num_scalar_prefetch=0,
            grid=grid,
            in_specs=[
                # f32 scalar params in SMEM, untiled
                pl.BlockSpec(memory_space=pltpu.MemorySpace.SMEM),
                pl.BlockSpec(memory_space=pltpu.MemorySpace.SMEM),
                # activation tile (lane-dense, ~1 MiB)
                pl.BlockSpec((tile_rows, lane), lambda i: (i, 0)),
            ],
            out_specs=pl.BlockSpec((tile_rows, lane), lambda i: (i, 0)),
        ),
        compiler_params=pltpu.CompilerParams(
            dimension_semantics=("parallel",),
        ),
        cost_estimate=cost,
    )(r, phi, x2d)

    out_flat = out2d.reshape(-1)
    if padded:
        out_flat = out_flat[:n]
    return out_flat.reshape(orig_shape)


if __name__ == "__main__":
    key = jax.random.PRNGKey(0)

    # Deterministic parameter init matching nn.Parameter(torch.ones(1)).
    w1 = jnp.ones((1,), dtype=jnp.float32)
    w2 = jnp.ones((1,), dtype=jnp.float32)

    # Case 1: typical NCHW input (no padding path, single/multi block).
    x = jax.random.normal(key, (2, 4, 16, 16), dtype=jnp.float32)
    out = waveact(x, w1, w2)
    jax.block_until_ready(out)
    ref = w1[0] * jnp.sin(x) + w2[0] * jnp.cos(x)
    assert out.shape == x.shape and out.dtype == x.dtype
    # R*sin(x+phi) is mathematically identical; ULP-level differences only.
    assert jnp.allclose(out, ref, atol=1e-5, rtol=1e-5)

    # Case 2: awkward size exercising the padding + multi-block path.
    key2 = jax.random.PRNGKey(0)
    x2 = jax.random.normal(key2, (3, 5, 7, 11), dtype=jnp.float32)
    out2 = waveact(x2, w1, w2)
    jax.block_until_ready(out2)
    ref2 = w1[0] * jnp.sin(x2) + w2[0] * jnp.cos(x2)
    assert out2.shape == x2.shape and out2.dtype == x2.dtype
    assert jnp.allclose(out2, ref2, atol=1e-5, rtol=1e-5)

    print("KERNEL_OK")
</pallas_src>

<mosaic_0001>
module attributes {stable_mosaic.version = 11 : i64} {
  func.func @waveact_kernel(%arg0: i32, %arg1: memref<1xf32, #tpu.memory_space<smem>>, %arg2: memref<1xf32, #tpu.memory_space<smem>>, %arg3: memref<8x256xf32, #tpu.memory_space<vmem>>, %arg4: memref<8x256xf32, #tpu.memory_space<vmem>>) attributes {dimension_semantics = [#tpu.dimension_semantics<parallel>], iteration_bounds = array<i64: 1>, scalar_prefetch = 0 : i64, scratch_operands = 0 : i64, tpu.core_type = #tpu.core_type<tc>, window_params = [{transform_indices = @transform_0, window_bounds = array<i64: 1>}, {transform_indices = @transform_1, window_bounds = array<i64: 1>}, {transform_indices = @transform_2, window_bounds = array<i64: 8, 256>}, {transform_indices = @transform_3, window_bounds = array<i64: 8, 256>}]} {
    %c0 = arith.constant 0 : index
    %c0_0 = arith.constant 0 : index
    %0 = vector.load %arg3[%c0, %c0_0] : memref<8x256xf32, #tpu.memory_space<vmem>>, vector<8x256xf32>
    %c0_1 = arith.constant 0 : index
    %1 = memref.load %arg1[%c0_1] : memref<1xf32, #tpu.memory_space<smem>>
    %c0_2 = arith.constant 0 : index
    %2 = memref.load %arg2[%c0_2] : memref<1xf32, #tpu.memory_space<smem>>
    %3 = vector.broadcast %2 : f32 to vector<8x256xf32>
    %4 = arith.addf %0, %3 : vector<8x256xf32>
    %5 = math.sin %4 : vector<8x256xf32>
    %6 = vector.broadcast %1 : f32 to vector<8x256xf32>
    %7 = arith.mulf %6, %5 : vector<8x256xf32>
    %c0_3 = arith.constant 0 : index
    %c0_4 = arith.constant 0 : index
    %8 = vector.load %arg4[%c0_3, %c0_4] : memref<8x256xf32, #tpu.memory_space<vmem>>, vector<8x256xf32>
    tpu.vector_store %arg4[%c0_3, %c0_4], %7 {strides = array<i32>} : memref<8x256xf32, #tpu.memory_space<vmem>>, vector<8x256xf32>,
    return
  }
  func.func @transform_0(%arg0: i32) -> i32 {
    %c0_i32 = arith.constant 0 : i32
    %c0_i32_0 = arith.constant 0 : i32
    return %c0_i32 : i32
  }
  func.func @transform_1(%arg0: i32) -> i32 {
    %c0_i32 = arith.constant 0 : i32
    %c0_i32_0 = arith.constant 0 : i32
    return %c0_i32 : i32
  }
  func.func @transform_2(%arg0: i32) -> (i32, i32) {
    %c0_i32 = arith.constant 0 : i32
    %c0_i32_0 = arith.constant 0 : i32
    return %arg0, %c0_i32 : i32, i32
  }
  func.func @transform_3(%arg0: i32) -> (i32, i32) {
    %c0_i32 = arith.constant 0 : i32
    %c0_i32_0 = arith.constant 0 : i32
    return %arg0, %c0_i32 : i32, i32
  }
}

</mosaic_0001>

<bundles_post_ra>
// kernel: tpu_custom_call.1
= control target key start
LH: loop header
LB: loop body
LE: loop exit
PB: predicated region body
PF: predicated region fallthrough
CT: control target
= control target key end

     0   :  { %10 = vsyncpa [#allocation5], 0  ;;  %s472_s0 = inlined_call_operand.<no memory space> [shape: f32[1], index: 0, kind: input, shape index: {}]   ;;  %s473_s1 = inlined_call_operand.<no memory space> [shape: f32[1], index: 1, kind: input, shape index: {}]   ;;  %s474_s2 = inlined_call_operand.hbm [shape: f32[8,256], index: 2, kind: input, shape index: {}]   ;;  %s475_s3 = inlined_call_operand.hbm [shape: f32[8,256], index: 3, kind: output, shape index: {}]  }
   0x1   :  { %11 = vsyncpa [#allocation6], 0  ;;  %s344_s12 = smov [#allocation4]   ;;  %s296_s16 = scalar_lea.hbm %s474_s2, 256 }
   0x2   :  { %s22_s13 = sshll.u32 %s344_s12, 4  ;;  %p297_p0 = scmp.ne.s32.totalorder %s474_s2, %s296_s16  ;;  %s23_s13 = int_to_ptr.vmem [resolvable:$true] %s22_s13 }
   0x3   :  { %p300_p1 = scmp.lt.u32.totalorder %s296_s16, %s474_s2 }
   0x5   :  { %p302_p2 = pnand %p300_p1, %p297_p0 }
   0x7   :  { %305 = shalt.err (!%p302_p2)
}
   0x8   :  { %s306_s21 = scalar_lea.vmem %s23_s13, 256  ;;  %p311_p4 = scmp.lt.s32.totalorder %s23_s13, %s23_s13 }
   0x9   :  { %p307_p3 = scmp.ne.s32.totalorder %s23_s13, %s306_s21  ;;  %p312_p5 = scmp.lt.s32.totalorder %s306_s21, %s306_s21 }
   0xb   :  { %p313_p6 = por %p312_p5, %p311_p4 }
   0xd   :  { %p314_p7 = pnand %p313_p6, %p307_p3 }
   0xf   :  { %317 = shalt.err (!%p314_p7)
}
  0x10   :  { %25 = dma.hbm_to_vmem [thread:$0]  %s474_s2, 256, %s23_s13, [#allocation5]  }
  0x11   :  { %340 = dma.done.wait [#allocation5], 256  }
  0x12   :  { %341 = vsyncadd [#allocation5], 4294967040  ;;  %v33_v0 = vstv %s473_s1  ;;  %v29_v1 = vld [vmem:[#allocation4] sm:$0xff]  ;;  %v30_v2 = vld [vmem:[#allocation4 + $0x8] sm:$0xff]  ;;  %v345_v27 = vmov 683565275  }
  0x13   :  { %v387_v3 = vadd.f32 %v33_v0, %v29_v1  ;;  %v389_v4 = vadd.f32 %v33_v0, %v30_v2  ;;  %v346_v29 = vmov 2475754826   ;;  %v347_v31 = vmov 2131351028   ;;  %s351_s26 = smov [#allocation7]  }
  0x14   :  { %v348_v33 = vmov 2102212464   ;;  %v349_v35 = vmov 920167782   ;;  %v350_v43 = vmov 1326507024  }
  0x15   :  { %v36_v5 = vand.u32 2147483647, %v387_v3  ;;  %v39_v6 = vand.u32 2139095040, %v387_v3  ;;  %v140_v7 = vand.u32 2147483647, %v389_v4  ;;  %v143_v8 = vand.u32 2139095040, %v389_v4 }
  0x16   :  { %vm38_vm14 = vcmp.lt.s32.totalorder %v387_v3, 0  ;;  %s255_s27 = sshll.u32 %s351_s26, 4  ;;  %s256_s27 = int_to_ptr.vmem [resolvable:$true] %s255_s27 }
  0x17   :  { %v40_v9 = vshrl.u32 %v39_v6, 23  ;;  %v43_v10 = vand.u32 8388607, %v36_v5  ;;  %v144_v11 = vshrl.u32 %v143_v8, 23  ;;  %v147_v12 = vand.u32 8388607, %v140_v7  ;;  %p323_p9 = scmp.lt.s32.totalorder %s256_s27, %s256_s27 }
  0x18   :  { %vm37_vm15 = vcmp.le.f32.partialorder %v36_v5, 0.7853982 }
  0x19   :  { %v264_v13 = vadd.s32 4294967169, %v40_v9  ;;  %v268_v14 = vadd.s32 4294967169, %v144_v11  ;;  %v44_v16 = vor.u32 8388608, %v43_v10  ;;  %v148_v17 = vor.u32 8388608, %v147_v12 }
  0x1b   :  { %v46_v15 = vadd.s32 1, %v264_v13  ;;  %v150_v18 = vadd.s32 1, %v268_v14  ;;  %v399_v23 = vshll.u32 %v44_v16, 8  ;;  %v401_v25 = vshll.u32 %v148_v17, 8 }
  0x1d   :  { %vm47_vm0 = vcmp.gt.s32.totalorder %v46_v15, 0  ;;  %vm151_vm1 = vcmp.gt.s32.totalorder %v150_v18, 0 }
  0x1e   :  { %v48_v19 = vsel %vm47_vm0, %v46_v15, 0  ;;  %v152_v22 = vsel %vm151_vm1, %v150_v18, 0  ;;  %vm142_vm0 = vcmp.lt.s32.totalorder %v389_v4, 0  ;;  %vm141_vm1 = vcmp.le.f32.partialorder %v140_v7, 0.7853982 }
  0x1f   :  { %v49_v20 = vshrl.u32 %v48_v19, 5  ;;  %v50_v21 = vand.u32 31, %v48_v19  ;;  %v154_v24 = vand.u32 31, %v152_v22  ;;  %v403_v37 = vshrl.u32 %v152_v22, 5 }
  0x21   :  { %v51_v26 = vsub.s32 32, %v50_v21  ;;  %v53_v28 = vshll.u32 %v345_v27, %v50_v21  ;;  %v56_v30 = vshll.u32 %v346_v29, %v50_v21  ;;  %v59_v32 = vshll.u32 %v347_v31, %v50_v21 }
  0x22   :  { %v62_v34 = vshll.u32 %v348_v33, %v50_v21  ;;  %v65_v36 = vshll.u32 %v349_v35, %v50_v21  ;;  %vm68_vm2 = vcmp.lt.s32.totalorder %v49_v20, 1  ;;  %vm69_vm3 = vcmp.lt.s32.totalorder %v49_v20, 2 }
  0x23   :  { %v52_v38 = vshrl.u32 %v345_v27, %v51_v26  ;;  %v54_v39 = vshrl.u32 %v346_v29, %v51_v26  ;;  %v57_v40 = vshrl.u32 %v347_v31, %v51_v26  ;;  %v60_v41 = vshrl.u32 %v348_v33, %v51_v26 }
  0x24   :  { %v63_v42 = vshrl.u32 %v349_v35, %v51_v26  ;;  %v66_v44 = vshrl.u32 %v350_v43, %v51_v26  ;;  %vm71_vm4 = vcmp.lt.s32.totalorder %v49_v20, 4  ;;  %v155_v48 = vsub.s32 32, %v154_v24 }
  0x25   :  { %v55_v45 = vor.u32 %v54_v39, %v53_v28  ;;  %v58_v46 = vor.u32 %v57_v40, %v56_v30  ;;  %v61_v47 = vor.u32 %v60_v41, %v59_v32  ;;  %vm70_vm5 = vcmp.lt.s32.totalorder %v49_v20, 3 }
  0x26   :  { %v64_v49 = vor.u32 %v63_v42, %v62_v34  ;;  %v67_v50 = vor.u32 %v66_v44, %v65_v36  ;;  %v157_v51 = vshll.u32 %v345_v27, %v154_v24  ;;  %v160_v59 = vshll.u32 %v346_v29, %v154_v24 }
  0x27   :  { %v72_v52 = vsel %vm68_vm2, %v52_v38, %v55_v45  ;;  %v73_v53 = vsel %vm71_vm4, %v61_v47, 2102212464  ;;  %v76_v54 = vsel %vm68_vm2, %v55_v45, %v58_v46  ;;  %v80_v55 = vsel %vm68_vm2, %v58_v46, %v61_v47 }
  0x28   :  { %v74_v56 = vsel %vm70_vm5, %v58_v46, %v73_v53  ;;  %v77_v57 = vsel %vm71_vm4, %v64_v49, 920167782  ;;  %v81_v58 = vsel %vm71_vm4, %v67_v50, 1326507024  ;;  %v156_v62 = vshrl.u32 %v345_v27, %v155_v48 }
  0x29   :  { %v78_v60 = vsel %vm70_vm5, %v61_v47, %v77_v57  ;;  %v82_v61 = vsel %vm70_vm5, %v64_v49, %v81_v58  ;;  %v158_v63 = vshrl.u32 %v346_v29, %v155_v48  ;;  %v75_v0 = vsel %vm69_vm3, %v72_v52, %v74_v56 }
  0x2a   :  { %v79_v1 = vsel %vm69_vm3, %v76_v54, %v78_v60  ;;  %v83_v2 = vsel %vm69_vm3, %v80_v55, %v82_v61  ;;  %v161_v6 = vshrl.u32 %v347_v31, %v155_v48  ;;  %v163_v14 = vshll.u32 %v347_v31, %v154_v24 }
  0x2b   :  { %v412_v8 = vmul.u32.u64.low %v399_v23, %v83_v2  ;;  %v413_v9 = vmul.u32.u64.high %v399_v23, %v83_v2, %v412_v8  ;;  %v416_v10 = vmul.u32.u64.low %v399_v23, %v79_v1  ;;  %v417_v11 = vmul.u32.u64.high %v399_v23, %v79_v1, %v416_v10 }
  0x2c   :  { %v159_v12 = vor.u32 %v158_v63, %v157_v51  ;;  %v162_v13 = vor.u32 %v161_v6, %v160_v59  ;;  %v164_v15 = vshrl.u32 %v348_v33, %v155_v48  ;;  %v166_v16 = vshll.u32 %v348_v33, %v154_v24 }
  0x2d   :  { %v167_v17 = vshrl.u32 %v349_v35, %v155_v48  ;;  %v169_v18 = vshll.u32 %v349_v35, %v154_v24  ;;  %v170_v19 = vshrl.u32 %v350_v43, %v155_v48  ;;  %v91_v20 = vmul.u32 %v399_v23, %v75_v0 }
  0x2e   :  { %v165_v21 = vor.u32 %v164_v15, %v163_v14  ;;  %vm172_vm6 = vcmp.lt.s32.totalorder %v403_v37, 1  ;;  %vm173_vm7 = vcmp.lt.s32.totalorder %v403_v37, 2  ;;  %vm93_vm8 = vc.u32 %v413_v9, %v416_v10 }
  0x2f   :  { %v94_v22 = vadd.s32 1, %v417_v11  ;;  %v168_v26 = vor.u32 %v167_v17, %v166_v16  ;;  %vm174_vm9 = vcmp.lt.s32.totalorder %v403_v37, 3  ;;  %v171_v27 = vor.u32 %v170_v19, %v169_v18 }
  0x30   :  { %vm175_vm10 = vcmp.lt.s32.totalorder %v403_v37, 4  ;;  %v176_v28 = vsel %vm172_vm6, %v156_v62, %v159_v12  ;;  %v180_v24 = vsel %vm172_vm6, %v159_v12, %v162_v13  ;;  %v184_v31 = vsel %vm172_vm6, %v162_v13, %v165_v21 }
  0x31   :  { %v95_v29 = vsel %vm93_vm8, %v94_v22, %v417_v11  ;;  %v177_v23 = vsel %vm175_vm10, %v165_v21, 2102212464  ;;  %v181_v30 = vsel %vm175_vm10, %v168_v26, 920167782  ;;  %v185_v35 = vsel %vm175_vm10, %v171_v27, 1326507024 }
  0x32   :  { %v96_v32 = vadd.s32 %v95_v29, %v91_v20  ;;  %v178_v33 = vsel %vm174_vm9, %v162_v13, %v177_v23  ;;  %v182_v34 = vsel %vm174_vm9, %v165_v21, %v181_v30  ;;  %v186_v39 = vsel %vm174_vm9, %v168_v26, %v185_v35 }
  0x33   :  { %v179_v36 = vsel %vm173_vm7, %v176_v28, %v178_v33  ;;  %v183_v38 = vsel %vm173_vm7, %v180_v24, %v182_v34  ;;  %v187_v41 = vsel %vm173_vm7, %v184_v31, %v186_v39  ;;  %v92_v60 = vadd.s32 %v416_v10, %v413_v9 }
  0x34   :  { %v97_v40 = vadd.s32 536870912, %v96_v32  ;;  %v434_v42 = vmul.u32.u64.low %v401_v25, %v183_v38  ;;  %v435_v43 = vmul.u32.u64.high %v401_v25, %v183_v38, %v434_v42  ;;  %v195_v47 = vmul.u32 %v401_v25, %v179_v36 }
  0x35   :  { %v438_v44 = vmul.u32.u64.low %v401_v25, %v187_v41  ;;  %v439_v45 = vmul.u32.u64.high %v401_v25, %v187_v41, %v438_v44  ;;  %vm128_vm5 = vweird.f32 %v387_v3  ;;  %vm232_vm9 = vweird.f32 %v389_v4 }
  0x36   :  { %v98_v46 = vshrl.u32 %v97_v40, 30  ;;  %v198_v49 = vadd.s32 1, %v435_v43 }
  0x37   :  { %vm197_vm11 = vc.u32 %v439_v45, %v434_v42  ;;  %v196_v16 = vadd.s32 %v434_v42, %v439_v45 }
  0x38   :  { %v99_v48 = vshll.u32 %v98_v46, 30  ;;  %v199_v37 = vsel %vm197_vm11, %v198_v49, %v435_v43  ;;  %v122_v9 = vsub.s32 4, %v98_v46 }
  0x39   :  { %v200_v51 = vadd.s32 %v199_v37, %v195_v47 }
  0x3a   :  { %v100_v50 = vsub.s32 %v96_v32, %v99_v48  ;;  %v123_v28 = vsel %vm38_vm14, %v122_v9, %v98_v46 }
  0x3b   :  { %v201_v53 = vadd.s32 536870912, %v200_v51  ;;  %v125_v31 = vsel %vm37_vm15, 0, %v123_v28 }
  0x3c   :  { %v102_v52 = vsub.s32 0, %v100_v50  ;;  %v129_v36 = vadd.s32 3, %v125_v31 }
  0x3d   :  { %v202_v55 = vshrl.u32 %v201_v53, 30 }
  0x3e   :  { %v265_v54 = vmin.u32 %v102_v52, %v100_v50  ;;  %v130_v40 = vand.u32 3, %v129_v36 }
  0x3f   :  { %v203_v57 = vshll.u32 %v202_v55, 30  ;;  %v226_v35 = vsub.s32 4, %v202_v55 }
  0x40   :  { %v104_v56 = vclz %v265_v54  ;;  %vm135_vm2 = vcmp.eq.s32.totalorder %v130_v40, 2  ;;  %vm132_vm3 = vcmp.eq.s32.totalorder %v130_v40, 0  ;;  %vm131_vm4 = vcmp.lt.s32.totalorder %v130_v40, 2 }
  0x41   :  { %v204_v59 = vsub.s32 %v200_v51, %v203_v57  ;;  %v227_v39 = vsel %vm142_vm0, %v226_v35, %v202_v55 }
  0x42   :  { %v266_v58 = vadd.s32 4294967294, %v104_v56  ;;  %v229_v43 = vsel %vm141_vm1, 0, %v227_v39 }
  0x43   :  { %v206_v61 = vsub.s32 0, %v204_v59  ;;  %v233_v47 = vadd.s32 3, %v229_v43 }
  0x44   :  { %vm267_vm12 = vcmp.lt.s32.totalorder %v266_v58, 0 }
  0x45   :  { %v107_v25 = vsel %vm267_vm12, 0, %v266_v58  ;;  %v269_v1 = vmin.u32 %v206_v61, %v204_v59  ;;  %v234_v51 = vand.u32 3, %v233_v47 }
  0x46   :  { %v108_v62 = vsub.s32 32, %v107_v25  ;;  %v109_v63 = vshll.u32 %v100_v50, %v107_v25  ;;  %v112_v0 = vsub.s32 4294967266, %v107_v25  ;;  %v244_v50 = vstv %s472_s0  ;;  %s318_s0 = scalar_lea.vmem %s256_s27, 256 }
  0x47   :  { %v208_v8 = vclz %v269_v1  ;;  %vm239_vm6 = vcmp.eq.s32.totalorder %v234_v51, 2  ;;  %vm236_vm7 = vcmp.eq.s32.totalorder %v234_v51, 0  ;;  %vm235_vm8 = vcmp.lt.s32.totalorder %v234_v51, 2  ;;  %p319_p8 = scmp.ne.s32.totalorder %s256_s27, %s318_s0  ;;  %p324_p10 = scmp.lt.s32.totalorder %s318_s0, %s318_s0 }
  0x48   :  { %v110_v2 = vshrl.u32 %v92_v60, %v108_v62  ;;  %v113_v6 = vadd.s32 127, %v112_v0 }
  0x49   :  { %v270_v13 = vadd.s32 4294967294, %v208_v8  ;;  %p325_p11 = por %p324_p10, %p323_p9 }
  0x4a   :  { %v111_v11 = vor.u32 %v110_v2, %v109_v63  ;;  %v114_v12 = vshll.u32 %v113_v6, 23 }
  0x4b   :  { %vm271_vm13 = vcmp.lt.s32.totalorder %v270_v13, 0  ;;  %p326_p12 = pnand %p325_p11, %p319_p8 }
  0x4c   :  { %v115_v14 = vor.u32 4788187, %v114_v12  ;;  %v118_v15 = vcvt.s32.f32 %v111_v11  ;;  %v211_v10 = vsel %vm271_vm13, 0, %v270_v13 }
  0x4d   :  { %v212_v18 = vsub.s32 32, %v211_v10  ;;  %v213_v19 = vshll.u32 %v204_v59, %v211_v10  ;;  %v216_v20 = vsub.s32 4294967266, %v211_v10 }
  0x4e   :  { %v116_v17 = vand.u32 2147483647, %v115_v14 }
  0x4f   :  { %v214_v22 = vshrl.u32 %v196_v16, %v212_v18  ;;  %v217_v26 = vadd.s32 127, %v216_v20 }
  0x50   :  { %v119_v21 = vmul.f32 %v118_v15, %v116_v17 }
  0x51   :  { %v215_v24 = vor.u32 %v214_v22, %v213_v19  ;;  %v218_v29 = vshll.u32 %v217_v26, 23 }
  0x52   :  { %v120_v27 = vxor.u32 2147483648, %v119_v21 }
  0x53   :  { %v219_v32 = vor.u32 4788187, %v218_v29  ;;  %v222_v33 = vcvt.s32.f32 %v215_v24 }
  0x54   :  { %v121_v23 = vsel %vm38_vm14, %v120_v27, %v119_v21 }
  0x55   :  { %v124_v30 = vsel %vm37_vm15, %v387_v3, %v121_v23  ;;  %v220_v34 = vand.u32 2147483647, %v219_v32 }
  0x56   :  { %288 = vcosq.f32 %v124_v30 }
  0x57   :  { %290 = vsinq.f32 %v124_v30  ;;  %v223_v38 = vmul.f32 %v222_v33, %v220_v34 }
  0x59   :  { %v224_v5 = vxor.u32 2147483648, %v223_v38 }
  0x5b   :  { %v225_v41 = vsel %vm142_vm0, %v224_v5, %v223_v38 }
  0x5c   :  { %v228_v42 = vsel %vm141_vm1, %v389_v4, %v225_v41 }
  0x5d   :  { %292 = vcosq.f32 %v228_v42 }
  0x5e   :  { %294 = vsinq.f32 %v228_v42 }
  0x60   :  { %v289_v44 = vpop.eup %288 }
  0x61   :  { %v291_v45 = vpop.eup %290  ;;  %v136_v46 = vxor.u32 2147483648, %v289_v44 }
  0x62   :  { %v133_v48 = vxor.u32 2147483648, %v291_v45 }
  0x63   :  { %v137_v7 = vsel %vm135_vm2, %v136_v46, %v291_v45 }
  0x64   :  { %v134_v49 = vsel %vm132_vm3, %v289_v44, %v133_v48 }
  0x65   :  { %v138_v37 = vsel %vm131_vm4, %v134_v49, %v137_v7 }
  0x66   :  { %v139_v52 = vsel %vm128_vm5, nan, %v138_v37 }
  0x67   :  { %v245_v53 = vmul.f32 %v244_v50, %v139_v52  ;;  %v293_v54 = vpop.eup %292 }
  0x68   :  { %v295_v55 = vpop.eup %294  ;;  %v240_v56 = vxor.u32 2147483648, %v293_v54 }
  0x69   :  { %247 = vst [vmem:[#allocation7] sm:$0xff] %v245_v53  ;;  %v237_v57 = vxor.u32 2147483648, %v295_v55 }
  0x6a   :  { %v241_v3 = vsel %vm239_vm6, %v240_v56, %v295_v55 }
  0x6b   :  { %v238_v58 = vsel %vm236_vm7, %v293_v54, %v237_v57 }
  0x6c   :  { %v242_v59 = vsel %vm235_vm8, %v238_v58, %v241_v3 }
  0x6d   :  { %v243_v60 = vsel %vm232_vm9, nan, %v242_v59 }
  0x6e   :  { %v246_v25 = vmul.f32 %v244_v50, %v243_v60 }
  0x70   :  { %248 = vst [vmem:[#allocation7 + $0x8] sm:$0xff] %v246_v25 }
  0x71   :  { %329 = shalt.err (!%p326_p12)
}
  0x72   :  { %s330_s30 = scalar_lea.hbm %s475_s3, 256 }
  0x73   :  { %p331_p13 = scmp.ne.s32.totalorder %s475_s3, %s330_s30  ;;  %p334_p0 = scmp.lt.u32.totalorder %s330_s30, %s475_s3 }
  0x75   :  { %p336_p1 = pnand %p334_p0, %p331_p13 }
  0x77   :  { %339 = shalt.err (!%p336_p1)
}
  0x78   :  { %258 = dma.vmem_to_hbm [thread:$0]  %s256_s27, 256, %s475_s3, [#allocation6]  }
  0x79   :  { %342 = dma.done.wait [#allocation6], 256  }
  0x7a   :  { %343 = vsyncadd [#allocation6], 4294967040 }
  0x7b   :  { %262 = vsyncpa [#allocation5], 1 }
  0x7c   :  { %263 = vsyncpa [#allocation6], 1 }

</bundles_post_ra>
